<compile_context>
chip_gen: v7x
topology: tpu7x:2x2x1
jax: 0.10.0
libtpu: 0.0.40
codegen_flags: <defaults>
</compile_context>

<pallas_src>
import jax
import jax.numpy as jnp
from jax.experimental import pallas as pl
from jax.experimental.pallas import tpu as pltpu

HIDDEN = 32


def _round_up(n, m):
    return ((n + m - 1) // m) * m


def nam_chunk_kernel(x_ref, w1_ref, c1_ref, w2_ref, c2_ref, w3_ref, c3_ref,
                     out_ref):
    """One (batch-tile, feature-chunk) grid step.  D = Fc * H.

    x_ref  : (1, bt, Fc)   packed input columns of this chunk
    w1_ref : (1, Fc, D)    row f holds exp(w1_f) in block f
    c1_ref : (1, 1, D)     b1_f * exp(w1_f), packed
    w2_ref : (1, D, D)     block-diagonal exp(w2_f)
    c2_ref : (1, 1, D)     b2_f @ exp(w2_f), packed
    w3_ref : (1, D, Fc)    column f holds exp(w3_f) in rows of block f
    c3_ref : (1, 1, Fc)    b3_f @ exp(w3_f)
    out_ref: (1, bt, Fc)   per-feature subnet outputs for this chunk
    """
    x = x_ref[0]                                                    # (bt, Fc)

    # ExU1:  (x - b1) @ exp(w1) == x @ W1p - C1   (bias folded at pack time)
    h = jnp.dot(x, w1_ref[0], preferred_element_type=jnp.float32) - c1_ref[0]
    h = jnp.clip(h, 0.0, 1.0)                                       # (bt, D)

    # ExU2:  block-diagonal, so cross-feature terms are exactly zero.
    h = jnp.dot(h, w2_ref[0], preferred_element_type=jnp.float32) - c2_ref[0]
    h = jnp.clip(h, 0.0, 1.0)                                       # (bt, D)

    # ExU3:  one output column per feature of the chunk.
    y = jnp.dot(h, w3_ref[0], preferred_element_type=jnp.float32) - c3_ref[0]
    out_ref[0] = jnp.clip(y, 0.0, 1.0)                              # (bt, Fc)


def _pack_params(params, F, Fc):
    """One-time preprocessing: exp() of all ExU weights, bias folding and
    block-diagonal packing of Fc features per chunk (all outside the kernel).
    Padded (dummy) features get all-zero weights/offsets, so their subnet
    output is clip(0, 0, 1) == 0 and the additive sum is unchanged."""
    w1, b1, w2, b2, w3, b3, _ = params
    H = w1.shape[-1]
    D = Fc * H
    F_pad = _round_up(F, Fc)
    nc = F_pad // Fc
    pad = F_pad - F

    exp_w1 = jnp.exp(w1[:, 0, :])            # (F, H)
    exp_w2 = jnp.exp(w2)                     # (F, H, H)
    exp_w3 = jnp.exp(w3[:, :, 0])            # (F, H)
    b1v = b1[:, 0, 0]                        # (F,)
    b2v = b2[:, 0, :]                        # (F, H)
    b3v = b3[:, 0, :]                        # (F, H)

    if pad:
        zf = lambda a: jnp.pad(a, [(0, pad)] + [(0, 0)] * (a.ndim - 1))
        exp_w1, exp_w2, exp_w3 = zf(exp_w1), zf(exp_w2), zf(exp_w3)
        b1v, b2v, b3v = zf(b1v), zf(b2v), zf(b3v)

    exp_w1 = exp_w1.reshape(nc, Fc, H)
    exp_w2 = exp_w2.reshape(nc, Fc, H, H)
    exp_w3 = exp_w3.reshape(nc, Fc, H)
    b1v = b1v.reshape(nc, Fc)
    b2v = b2v.reshape(nc, Fc, H)
    b3v = b3v.reshape(nc, Fc, H)

    eye = jnp.eye(Fc, dtype=jnp.float32)

    # Layer 1: W1p[c, f, f*H + j] = exp(w1_f[j]);  C1[c, 0, f*H+j] = b1_f*exp(w1_f[j])
    W1p = (exp_w1[:, :, None, :] * eye[None, :, :, None]).reshape(nc, Fc, D)
    C1 = (b1v[:, :, None] * exp_w1).reshape(nc, 1, D)

    # Layer 2: block-diagonal exp(w2);  C2 = b2 @ exp(w2) per feature
    W2p = (exp_w2[:, :, :, None, :] *
           eye[None, :, None, :, None]).reshape(nc, D, D)
    C2 = (b2v[:, :, :, None] * exp_w2).sum(axis=2).reshape(nc, 1, D)

    # Layer 3: W3p[c, f*H + j, f] = exp(w3_f[j]);  C3 = b3 @ exp(w3)
    W3p = (exp_w3[:, :, :, None] * eye[None, :, None, :]).reshape(nc, D, Fc)
    C3 = (b3v * exp_w3).sum(axis=2).reshape(nc, 1, Fc)

    return W1p, C1, W2p, C2, W3p, C3, F_pad, nc, D


def nam_forward(x, params, *, features_per_chunk=8, batch_tile=256):
    """x: (B, F) float32 -> (B, 1) float32."""
    bias = params[6]
    B, F = x.shape
    Fc = features_per_chunk

    W1p, C1, W2p, C2, W3p, C3, F_pad, nc, D = _pack_params(params, F, Fc)

    # Batch padding / tiling (multiple of 8 sublanes; tile large batches).
    B_pad = _round_up(B, 8)
    if B_pad <= 2 * batch_tile:
        bt = B_pad
    else:
        bt = batch_tile
        B_pad = _round_up(B_pad, bt)

    xp = x
    if B_pad != B or F_pad != F:
        xp = jnp.pad(x, ((0, B_pad - B), (0, F_pad - F)))
    # (B_pad, F_pad) -> (nc, B_pad, Fc): chunk-major, lane-dense per-chunk blocks.
    xp = jnp.transpose(xp.reshape(B_pad, nc, Fc), (1, 0, 2))

    out = pl.pallas_call(
        nam_chunk_kernel,
        out_shape=jax.ShapeDtypeStruct((nc, B_pad, Fc), jnp.float32),
        grid_spec=pltpu.PrefetchScalarGridSpec(
            num_scalar_prefetch=0,
            grid=(B_pad // bt, nc),
            in_specs=[
                pl.BlockSpec((1, bt, Fc), lambda bi, c: (c, bi, 0)),  # x
                pl.BlockSpec((1, Fc, D), lambda bi, c: (c, 0, 0)),    # W1p
                pl.BlockSpec((1, 1, D), lambda bi, c: (c, 0, 0)),     # C1
                pl.BlockSpec((1, D, D), lambda bi, c: (c, 0, 0)),     # W2p
                pl.BlockSpec((1, 1, D), lambda bi, c: (c, 0, 0)),     # C2
                pl.BlockSpec((1, D, Fc), lambda bi, c: (c, 0, 0)),    # W3p
                pl.BlockSpec((1, 1, Fc), lambda bi, c: (c, 0, 0)),    # C3
            ],
            out_specs=pl.BlockSpec((1, bt, Fc), lambda bi, c: (c, bi, 0)),
        ),
        compiler_params=pltpu.CompilerParams(
            dimension_semantics=("parallel", "parallel")),
    )(xp, W1p, C1, W2p, C2, W3p, C3)

    # (nc, B_pad, Fc) -> (B, F) subnet-output matrix (the torch.cat), then the
    # additive sum + global bias in XLA (dropout = identity in eval mode).
    Fmat = jnp.transpose(out, (1, 0, 2)).reshape(B_pad, F_pad)[:B, :F]
    return jnp.sum(Fmat, axis=1, keepdims=True) + bias[0, 0]


def nam_reference(x, params):
    """Pure-JAX reference mirroring the PyTorch forward (dropout = identity)."""
    w1, b1, w2, b2, w3, b3, bias = params
    B, F = x.shape
    hp = jax.lax.Precision.HIGHEST
    cols = []
    for i in range(F):
        xi = x[:, i:i + 1]
        h = jnp.clip(jnp.dot(xi - b1[i], jnp.exp(w1[i]), precision=hp), 0., 1.)
        h = jnp.clip(jnp.dot(h - b2[i], jnp.exp(w2[i]), precision=hp), 0., 1.)
        y = jnp.clip(jnp.dot(h - b3[i], jnp.exp(w3[i]), precision=hp), 0., 1.)
        cols.append(y)
    Fmat = jnp.concatenate(cols, axis=1)
    return jnp.sum(Fmat, axis=1, keepdims=True) + bias[0, 0]


if __name__ == "__main__":
    B, F, H = 128, 16, HIDDEN

    key = jax.random.PRNGKey(0)
    ks = jax.random.split(key, 8)

    x = jax.random.normal(ks[0], (B, F), dtype=jnp.float32)

    # Deterministic parameter init. NOTE: the PyTorch __init__ re-initializes
    # w with N(0, 0.5) (overriding the N(3.5, 0.5) init) and leaves b
    # uninitialized; here both w and b are drawn from N(0, 0.5).
    w1 = 0.5 * jax.random.normal(ks[1], (F, 1, H), dtype=jnp.float32)
    b1 = 0.5 * jax.random.normal(ks[2], (F, 1, 1), dtype=jnp.float32)
    w2 = 0.5 * jax.random.normal(ks[3], (F, H, H), dtype=jnp.float32)
    b2 = 0.5 * jax.random.normal(ks[4], (F, 1, H), dtype=jnp.float32)
    w3 = 0.5 * jax.random.normal(ks[5], (F, H, 1), dtype=jnp.float32)
    b3 = 0.5 * jax.random.normal(ks[6], (F, 1, H), dtype=jnp.float32)
    bias = jnp.zeros((1, 1), dtype=jnp.float32)   # NAM.b = zeros(1)

    params = (w1, b1, w2, b2, w3, b3, bias)

    out = jax.block_until_ready(nam_forward(x, params))
    ref = nam_reference(x, params)
    assert out.shape == (B, 1), out.shape
    assert jnp.allclose(out, ref, atol=1e-4, rtol=1e-4), \
        float(jnp.max(jnp.abs(out - ref)))

    # Also exercise the padding paths (B not a multiple of 8, F not a
    # multiple of the per-chunk feature count).
    B2, F2 = 13, 5
    x2 = jax.random.normal(ks[7], (B2, F2), dtype=jnp.float32)
    params2 = (w1[:F2], b1[:F2], w2[:F2], b2[:F2], w3[:F2], b3[:F2], bias)
    out2 = jax.block_until_ready(nam_forward(x2, params2))
    ref2 = nam_reference(x2, params2)
    assert out2.shape == (B2, 1), out2.shape
    assert jnp.allclose(out2, ref2, atol=1e-4, rtol=1e-4), \
        float(jnp.max(jnp.abs(out2 - ref2)))

    print("KERNEL_OK")
</pallas_src>

<mosaic_0001>
module attributes {stable_mosaic.version = 11 : i64} {
  func.func @nam_chunk_kernel(%arg0: i32, %arg1: i32, %arg2: memref<1x128x8xf32, #tpu.memory_space<vmem>>, %arg3: memref<1x8x256xf32, #tpu.memory_space<vmem>>, %arg4: memref<1x1x256xf32, #tpu.memory_space<vmem>>, %arg5: memref<1x256x256xf32, #tpu.memory_space<vmem>>, %arg6: memref<1x1x256xf32, #tpu.memory_space<vmem>>, %arg7: memref<1x256x8xf32, #tpu.memory_space<vmem>>, %arg8: memref<1x1x8xf32, #tpu.memory_space<vmem>>, %arg9: memref<1x128x8xf32, #tpu.memory_space<vmem>>) attributes {dimension_semantics = [#tpu.dimension_semantics<parallel>, #tpu.dimension_semantics<parallel>], iteration_bounds = array<i64: 1, 2>, scalar_prefetch = 0 : i64, scratch_operands = 0 : i64, tpu.core_type = #tpu.core_type<tc>, window_params = [{transform_indices = @transform_0, window_bounds = array<i64: 1, 128, 8>}, {transform_indices = @transform_1, window_bounds = array<i64: 1, 8, 256>}, {transform_indices = @transform_2, window_bounds = array<i64: 1, 1, 256>}, {transform_indices = @transform_3, window_bounds = array<i64: 1, 256, 256>}, {transform_indices = @transform_4, window_bounds = array<i64: 1, 1, 256>}, {transform_indices = @transform_5, window_bounds = array<i64: 1, 256, 8>}, {transform_indices = @transform_6, window_bounds = array<i64: 1, 1, 8>}, {transform_indices = @transform_7, window_bounds = array<i64: 1, 128, 8>}]} {
    %c0 = arith.constant 0 : index
    %c0_0 = arith.constant 0 : index
    %c0_1 = arith.constant 0 : index
    %0 = vector.load %arg2[%c0, %c0_0, %c0_1] : memref<1x128x8xf32, #tpu.memory_space<vmem>>, vector<1x128x8xf32>
    %1 = vector.shape_cast %0 : vector<1x128x8xf32> to vector<128x8xf32>
    %c0_2 = arith.constant 0 : index
    %c0_3 = arith.constant 0 : index
    %c0_4 = arith.constant 0 : index
    %2 = vector.load %arg3[%c0_2, %c0_3, %c0_4] : memref<1x8x256xf32, #tpu.memory_space<vmem>>, vector<1x8x256xf32>
    %3 = vector.shape_cast %2 : vector<1x8x256xf32> to vector<8x256xf32>
    %cst = arith.constant dense<0.000000e+00> : vector<128x256xf32>
    %4 = tpu.matmul %1, %3, %cst {dimension_numbers = #tpu.dot_dimension_numbers<[1], [0], [0], [1], [0, 0, 1, 1], [], []>} : vector<128x8xf32>, vector<8x256xf32>, vector<128x256xf32> -> vector<128x256xf32>
    %c0_5 = arith.constant 0 : index
    %c0_6 = arith.constant 0 : index
    %c0_7 = arith.constant 0 : index
    %5 = vector.load %arg4[%c0_5, %c0_6, %c0_7] : memref<1x1x256xf32, #tpu.memory_space<vmem>>, vector<1x1x256xf32>
    %6 = vector.shape_cast %5 : vector<1x1x256xf32> to vector<1x256xf32>
    %7 = vector.broadcast %6 : vector<1x256xf32> to vector<128x256xf32>
    %8 = arith.subf %4, %7 : vector<128x256xf32>
    %cst_8 = arith.constant 0.000000e+00 : f32
    %cst_9 = arith.constant 1.000000e+00 : f32
    %9 = vector.broadcast %cst_8 : f32 to vector<128x256xf32>
    %10 = arith.maximumf %9, %8 : vector<128x256xf32>
    %11 = vector.broadcast %cst_9 : f32 to vector<128x256xf32>
    %12 = arith.minimumf %11, %10 : vector<128x256xf32>
    %c0_10 = arith.constant 0 : index
    %c0_11 = arith.constant 0 : index
    %c0_12 = arith.constant 0 : index
    %13 = vector.load %arg5[%c0_10, %c0_11, %c0_12] : memref<1x256x256xf32, #tpu.memory_space<vmem>>, vector<1x256x256xf32>
    %14 = vector.shape_cast %13 : vector<1x256x256xf32> to vector<256x256xf32>
    %cst_13 = arith.constant dense<0.000000e+00> : vector<128x256xf32>
    %15 = tpu.matmul %12, %14, %cst_13 {dimension_numbers = #tpu.dot_dimension_numbers<[1], [0], [0], [1], [0, 0, 1, 1], [], []>} : vector<128x256xf32>, vector<256x256xf32>, vector<128x256xf32> -> vector<128x256xf32>
    %c0_14 = arith.constant 0 : index
    %c0_15 = arith.constant 0 : index
    %c0_16 = arith.constant 0 : index
    %16 = vector.load %arg6[%c0_14, %c0_15, %c0_16] : memref<1x1x256xf32, #tpu.memory_space<vmem>>, vector<1x1x256xf32>
    %17 = vector.shape_cast %16 : vector<1x1x256xf32> to vector<1x256xf32>
    %18 = vector.broadcast %17 : vector<1x256xf32> to vector<128x256xf32>
    %19 = arith.subf %15, %18 : vector<128x256xf32>
    %cst_17 = arith.constant 0.000000e+00 : f32
    %cst_18 = arith.constant 1.000000e+00 : f32
    %20 = vector.broadcast %cst_17 : f32 to vector<128x256xf32>
    %21 = arith.maximumf %20, %19 : vector<128x256xf32>
    %22 = vector.broadcast %cst_18 : f32 to vector<128x256xf32>
    %23 = arith.minimumf %22, %21 : vector<128x256xf32>
    %c0_19 = arith.constant 0 : index
    %c0_20 = arith.constant 0 : index
    %c0_21 = arith.constant 0 : index
    %24 = vector.load %arg7[%c0_19, %c0_20, %c0_21] : memref<1x256x8xf32, #tpu.memory_space<vmem>>, vector<1x256x8xf32>
    %25 = vector.shape_cast %24 : vector<1x256x8xf32> to vector<256x8xf32>
    %cst_22 = arith.constant dense<0.000000e+00> : vector<128x8xf32>
    %26 = tpu.matmul %23, %25, %cst_22 {dimension_numbers = #tpu.dot_dimension_numbers<[1], [0], [0], [1], [0, 0, 1, 1], [], []>} : vector<128x256xf32>, vector<256x8xf32>, vector<128x8xf32> -> vector<128x8xf32>
    %c0_23 = arith.constant 0 : index
    %c0_24 = arith.constant 0 : index
    %c0_25 = arith.constant 0 : index
    %27 = vector.load %arg8[%c0_23, %c0_24, %c0_25] : memref<1x1x8xf32, #tpu.memory_space<vmem>>, vector<1x1x8xf32>
    %28 = vector.shape_cast %27 : vector<1x1x8xf32> to vector<1x8xf32>
    %29 = vector.broadcast %28 : vector<1x8xf32> to vector<128x8xf32>
    %30 = arith.subf %26, %29 : vector<128x8xf32>
    %cst_26 = arith.constant 0.000000e+00 : f32
    %cst_27 = arith.constant 1.000000e+00 : f32
    %31 = vector.broadcast %cst_26 : f32 to vector<128x8xf32>
    %32 = arith.maximumf %31, %30 : vector<128x8xf32>
    %33 = vector.broadcast %cst_27 : f32 to vector<128x8xf32>
    %34 = arith.minimumf %33, %32 : vector<128x8xf32>
    %c0_28 = arith.constant 0 : index
    %c0_29 = arith.constant 0 : index
    %c0_30 = arith.constant 0 : index
    %35 = vector.load %arg9[%c0_28, %c0_29, %c0_30] : memref<1x128x8xf32, #tpu.memory_space<vmem>>, vector<1x128x8xf32>
    %36 = vector.shape_cast %35 : vector<1x128x8xf32> to vector<128x8xf32>
    %37 = vector.shape_cast %34 : vector<128x8xf32> to vector<1x128x8xf32>
    tpu.vector_store %arg9[%c0_28, %c0_29, %c0_30], %37 {strides = array<i32>} : memref<1x128x8xf32, #tpu.memory_space<vmem>>, vector<1x128x8xf32>,
    return
  }
  func.func @transform_0(%arg0: i32, %arg1: i32) -> (i32, i32, i32) {
    %c0_i32 = arith.constant 0 : i32
    %c0_i32_0 = arith.constant 0 : i32
    return %arg1, %arg0, %c0_i32 : i32, i32, i32
  }
  func.func @transform_1(%arg0: i32, %arg1: i32) -> (i32, i32, i32) {
    %c0_i32 = arith.constant 0 : i32
    %c0_i32_0 = arith.constant 0 : i32
    %c0_i32_1 = arith.constant 0 : i32
    return %arg1, %c0_i32, %c0_i32_0 : i32, i32, i32
  }
  func.func @transform_2(%arg0: i32, %arg1: i32) -> (i32, i32, i32) {
    %c0_i32 = arith.constant 0 : i32
    %c0_i32_0 = arith.constant 0 : i32
    %c0_i32_1 = arith.constant 0 : i32
    return %arg1, %c0_i32, %c0_i32_0 : i32, i32, i32
  }
  func.func @transform_3(%arg0: i32, %arg1: i32) -> (i32, i32, i32) {
    %c0_i32 = arith.constant 0 : i32
    %c0_i32_0 = arith.constant 0 : i32
    %c0_i32_1 = arith.constant 0 : i32
    return %arg1, %c0_i32, %c0_i32_0 : i32, i32, i32
  }
  func.func @transform_4(%arg0: i32, %arg1: i32) -> (i32, i32, i32) {
    %c0_i32 = arith.constant 0 : i32
    %c0_i32_0 = arith.constant 0 : i32
    %c0_i32_1 = arith.constant 0 : i32
    return %arg1, %c0_i32, %c0_i32_0 : i32, i32, i32
  }
  func.func @transform_5(%arg0: i32, %arg1: i32) -> (i32, i32, i32) {
    %c0_i32 = arith.constant 0 : i32
    %c0_i32_0 = arith.constant 0 : i32
    %c0_i32_1 = arith.constant 0 : i32
    return %arg1, %c0_i32, %c0_i32_0 : i32, i32, i32
  }
  func.func @transform_6(%arg0: i32, %arg1: i32) -> (i32, i32, i32) {
    %c0_i32 = arith.constant 0 : i32
    %c0_i32_0 = arith.constant 0 : i32
    %c0_i32_1 = arith.constant 0 : i32
    return %arg1, %c0_i32, %c0_i32_0 : i32, i32, i32
  }
  func.func @transform_7(%arg0: i32, %arg1: i32) -> (i32, i32, i32) {
    %c0_i32 = arith.constant 0 : i32
    %c0_i32_0 = arith.constant 0 : i32
    return %arg1, %arg0, %c0_i32 : i32, i32, i32
  }
}

</mosaic_0001>

<bundles_post_ra>
// kernel: tpu_custom_call.1
= control target key start
LH: loop header
LB: loop body
LE: loop exit
PB: predicated region body
PF: predicated region fallthrough
CT: control target
= control target key end

     0   :  { %12 = vsyncpa [#allocation3], 0  ;;  %s2376_s0 = inlined_call_operand.vmem [shape: f32[2,128,8], index: 0, kind: input, shape index: {}]   ;;  %s2377_s1 = inlined_call_operand.vmem [shape: f32[2,8,256], index: 1, kind: input, shape index: {}]   ;;  %s2378_s2 = inlined_call_operand.vmem [shape: f32[2,1,256], index: 2, kind: input, shape index: {}]   ;;  %s2379_s3 = inlined_call_operand.hbm [shape: f32[2,256,256], index: 3, kind: input, shape index: {}]   ;;  %s2380_s4 = inlined_call_operand.vmem [shape: f32[2,1,256], index: 4, kind: input, shape index: {}]   ;;  %s2381_s5 = inlined_call_operand.vmem [shape: f32[2,256,8], index: 5, kind: input, shape index: {}]   ;;  %s2382_s6 = inlined_call_operand.vmem [shape: f32[2,1,8], index: 6, kind: input, shape index: {}]   ;;  %s2383_s7 = inlined_call_operand.vmem [shape: f32[2,128,8], index: 7, kind: output, shape index: {}]  }
   0x1   :  { %14 = vsyncpa [#allocation3 + $0x1], 0  ;;  %s1933_s24 = smov 0   ;;  %s1935_s25 = smov 0  }
   0x2   :  { %s1937_s26 = smov 0   ;;  %s1939_s27 = smov 0  }
   0x3   :  { %s1941_s28 = smov 0   ;;  %s1943_s29 = smov 0  }
   0x4 LB: > { %s1530_s30 = sadd.s32 4294967295, %s1887_s29   ;;  %s29_s8 = sadd.s32 1, %s1883_s28  ;;  %s1887_s29 = sphi %s1943_s29, %s20_s29   ;;  %s1883_s28 = sphi %s1941_s28, %s2391_s28   ;;  %s1879_s27 = sphi %s1939_s27, %s2390_s27   ;;  %s1875_s26 = sphi %s1937_s26, %s2389_s26   ;;  %s1871_s25 = sphi %s1935_s25, %s2388_s25   ;;  %s1867_s24 = sphi %s1933_s24, %s2387_s24  }
   0x5   : > { %p30_p0 = scmp.ge.s32.totalorder %s29_s8, 2  ;;  %s119_s9 = sadd.s32 1, %s1875_s26 }
   0x6   : > { %p126_p1 = scmp.ne.s32.totalorder %s1875_s26, %s1871_s25  ;;  %p127_p2 = scmp.eq.s32.totalorder %s1887_s29, 0 }
   0x7   : > { %s2393_s8 = smov (%p30_p0, %s29_s8), 0  ;;  %p132_p4 = scmp.ne.s32.totalorder %s1871_s25, %s1867_s24 }
   0x8   : > { %p1969_p3 = por %p127_p2, %p126_p1  ;;  %s116_s11 = ssub.s32 %s1883_s28, %s2393_s8 }
   0x9   : > { %p133_p5 = scmp.eq.s32.totalorder %s1530_s30, 0  ;;  %p117_p6 = scmp.eq.s32.totalorder %s116_s11, 0 }
   0xa   : > { %p1755_p8 = scmp.lt.s32.totalorder %s1887_s29, 2  ;;  %s290_s14 = sand.u32 1, %s1875_s26  }
   0xb   : > { %p1976_p7 = por %p133_p5, %p132_p4  ;;  %s1568_s15 = sshll.u32 %s1883_s28, 13 }
   0xc   : > { %s1982_s13 = scalar_select %p117_p6, %s1875_s26, %s119_s9  }
   0xd   : > { %s1534_s16 = sshll.u32 %s290_s14, 9  ;;  %s1989_s19 = scalar_lea.hbm %s2379_s3, %s1568_s15 }
   0xe   : > { %s294_s20 = scalar_lea.vmem [#allocation2], %s1534_s16  ;;  %p1993_p9 = pnand %p1755_p8, %p1969_p3 }
   0xf   : > { %s301_s21 = sshll.u32 %s294_s20, 4  ;;  %s1999_s23 = scalar_lea.sflag [#allocation3], %s290_s14  ;;  %s1997_s21 = int_to_ptr.vmem [resolvable:$true] %s301_s21 }
  0x10   : > { %s1807_s24 = scalar_lea.hbm %s1989_s19, 8192  ;;  %p1809_p11 = pneg %p1993_p9 }
  0x11   : > { %p1808_p10 = scmp.ne.s32.totalorder %s1989_s19, %s1807_s24  ;;  %s1812_s10 = scalar_lea.hbm %s2379_s3, 16384 }
  0x12   : > { %p1813_p0 = scmp.lt.u32.totalorder %s1989_s19, %s2379_s3  ;;  %p1814_p1 = scmp.lt.u32.totalorder %s1812_s10, %s1807_s24 }
  0x13   : > { %p1810_p12 = pnand %p1809_p11, %p1808_p10  ;;  %p1816_p3 = scmp.lt.u32.totalorder %s1807_s24, %s1989_s19 }
  0x14   : > { %p1815_p2 = por %p1814_p1, %p1813_p0 }
  0x15   : > { %p1811_p13 = pneg %p1810_p12 }
  0x16   : > { %p1817_p4 = por %p1816_p3, %p1815_p2 }
  0x18   : > { %p1818_p5 = pnand %p1817_p4, %p1811_p13 }
  0x1a   : > { %1821 = shalt.err (!%p1818_p5)
}
  0x1b   : > { %s1822_s14 = scalar_lea.vmem %s1997_s21, 8192  ;;  %s1889_s16 = smov [#allocation2]  }
  0x1c   : > { %p1823_p6 = scmp.ne.s32.totalorder %s1997_s21, %s1822_s14  ;;  %s1827_s17 = sshll.u32 %s1889_s16, 4  ;;  %s1828_s17 = int_to_ptr.vmem [resolvable:$false] %s1827_s17 }
  0x1d   : > { %s1829_s18 = scalar_lea.vmem %s1828_s17, 16384  ;;  %p1830_p12 = scmp.lt.s32.totalorder %s1997_s21, %s1828_s17 }
  0x1e   : > { %p1825_p8 = pnand %p1823_p6, %p1809_p11  ;;  %p1831_p0 = scmp.lt.s32.totalorder %s1829_s18, %s1822_s14 }
  0x20   : > { %p1826_p10 = pneg %p1825_p8  ;;  %p1832_p1 = por %p1831_p0, %p1830_p12 }
  0x22   : > { %p1833_p2 = pnand %p1832_p1, %p1826_p10 }
  0x24   : > { %1836 = shalt.err (!%p1833_p2)
}
  0x25   : > { %s1890_s20 = smov 256   ;;  %s1891_s24 = smov 16  }
  0x26   : > { %1754 = dma.hbm_to_vmem [thread:$0]  (!%p1993_p9), %s1989_s19, 8192, %s1997_s21, %s1999_s23, %s1890_s20, %s1890_s20, %s1891_s24  }
  0x27   : > { %p1537_p11 = scmp.ge.s32.totalorder %s1887_s29, 1  ;;  %p330_p13 = scmp.lt.s32.totalorder %s1887_s29, 3 }
  0x29   : > { %p331_p3 = pnand %p1537_p11, %p330_p13 }
  0x2a   : > { %s336_s30 = sand.u32 (!%p331_p3), 1, %s1871_s25  }
  0x2b   : > { %334 = sbr.rel (%p331_p3) target bundleno = 781 (0x30d), region = 48  ;;  %s1538_s9 = sshll.u32 (!%p331_p3), %s336_s30, 9 }
  0x2c   : > { %s337_s10 = scalar_lea.sflag (!%p331_p3), [#allocation3], %s336_s30  ;;  %s2030_s11 = scalar_lea.vmem (!%p331_p3), [#allocation2], %s1538_s9 }
  0x32   : > { %1862 = dma.done.wait (%p1976_p7), %s337_s10, 8192  }
  0x33   : > { %1864 = vsyncadd (%p1976_p7), %s337_s10, 4294959104  ;;  %p406_p4 = scmp.lt.s32.totalorder %s1879_s27, 1  ;;  %v676_v0 = vlaneseq  ;;  %v1892_v1 = vmov 0.0   ;;  %vm464_vm0 = vcmask 64512   ;;  %v783_v13 = vld [vmem:[%s2030_s11 + $0x8] sm:$0xff]  ;;  %v785_v14 = vld [vmem:[%s2030_s11 + $0x18] sm:$0xff] }
  0x34   : > { %577 = vmatprep.mubr.f32.mxu0 %v1892_v1  ;;  %v782_v15 = vld [vmem:[%s2030_s11] sm:$0xff]  ;;  %v1653_v16 = vpack.c.bf16 %v785_v14, %v783_v13  ;;  %v784_v17 = vld [vmem:[%s2030_s11 + $0x10] sm:$0xff]  ;;  %v787_v18 = vld [vmem:[%s2030_s11 + $0x28] sm:$0xff] }
  0x35   : > { %s2395_s27 = smov (!%p406_p4, %s1879_s27), 1  ;;  %v2041_v2 = vshrl.u32 %v676_v0, 7  ;;  %v789_v19 = vld [vmem:[%s2030_s11 + $0x38] sm:$0xff]  ;;  %v1655_v20 = vpack.c.bf16 %v784_v17, %v782_v15  ;;  %v786_v22 = vld [vmem:[%s2030_s11 + $0x20] sm:$0xff]  ;;  %v788_v23 = vld [vmem:[%s2030_s11 + $0x30] sm:$0xff] }
  0x36   : > { %s1569_s19 = sshll.u32 %s2395_s27, 7  ;;  %s1570_s21 = sshll.u32 %s2395_s27, 4  ;;  %v1657_v21 = vpack.c.bf16 %v789_v19, %v787_v18  ;;  %v791_v24 = vld [vmem:[%s2030_s11 + $0x48] sm:$0xff]  ;;  %1654 = vmatprep.subr.bf16.mxu1 %v1653_v16  ;;  %v793_v25 = vld [vmem:[%s2030_s11 + $0x58] sm:$0xff]  ;;  %v1659_v26 = vpack.c.bf16 %v788_v23, %v786_v22  ;;  %v790_v29 = vld [vmem:[%s2030_s11 + $0x40] sm:$0xff] }
  0x37   : > { %s2050_s23 = scalar_lea.vmem %s2376_s0, %s1569_s19  ;;  %s419_s16 = scalar_lea.vmem %s2377_s1, %s1570_s21  ;;  %v678_v4 = vsub.s32 0, %v2041_v2  ;;  %v682_v5 = vsub.s32 1, %v2041_v2  ;;  %1656 = vmatpush1.bf16.msra.mxu1 %v1655_v20  ;;  %v1661_v28 = vpack.c.bf16 %v793_v25, %v791_v24  ;;  %v792_v30 = vld [vmem:[%s2030_s11 + $0x50] sm:$0xff]  ;;  %v795_v31 = vld [vmem:[%s2030_s11 + $0x68] sm:$0xff]  ;;  %v797_v32 = vld [vmem:[%s2030_s11 + $0x78] sm:$0xff] }
  0x38   : > { %s1543_s17 = sshll.u32 %s2395_s27, 1  ;;  %v463_v3 = vld [vmem:[%s419_s16 + $0x8] sm:$0xff]  ;;  %v462_v6 = vld [vmem:[%s419_s16] sm:$0xff]  ;;  %v448_v12 = vld [vmem:[%s2050_s23 + $0x10] sm:$0xff]  ;;  %1658 = vmatprep.subr.bf16.mxu1 %v1657_v21  ;;  %v1663_v33 = vpack.c.bf16 %v792_v30, %v790_v29  ;;  %v1665_v35 = vpack.c.bf16 %v797_v32, %v795_v31  ;;  %s1571_s30 = sshll.u32 %s2395_s27, 8 }
  0x39   : > { %s427_s24 = scalar_lea.vmem %s2380_s4, %s1543_s17  ;;  %v446_v7 = vld [vmem:[%s2050_s23] sm:$0xff]  ;;  %513 = vmatprep.subr.mxu0 %v463_v3  ;;  %v447_v11 = vld [vmem:[%s2050_s23 + $0x8] sm:$0xff]  ;;  %v449_v27 = vld [vmem:[%s2050_s23 + $0x18] sm:$0xff]  ;;  %s2186_s21 = scalar_lea.vmem %s2381_s5, %s1571_s30 }
  0x3a   : > { %v1007_v8 = vld [vmem:[%s427_s24] sm:$0x3]  ;;  %514 = vmatpush1.msra.mxu0 %v462_v6  ;;  %v796_v37 = vld [vmem:[%s2030_s11 + $0x70] sm:$0xff]  ;;  %v799_v38 = vld [vmem:[%s2030_s11 + $0x88] sm:$0xff]  ;;  %s423_s22 = scalar_lea.vmem %s2378_s2, %s1543_s17  ;;  %s435_s14 = scalar_lea.vmem %s2382_s6, %s2395_s27 }
  0x3b   : > { %v2066_v9 = vrot.slane %v1007_v8, %v678_v4  ;;  %v2070_v10 = vrot.slane %v1007_v8, %v682_v5  ;;  %1549 = vmatmul.mubr.msk.f32.vlgmr.msra.gmra.mrb[0].mxu0 %vm464_vm0, %v446_v7  ;;  %1660 = vmatpush1.bf16.msra.mxu1 %v1659_v26  ;;  %v450_v34 = vld [vmem:[%s2050_s23 + $0x20] sm:$0xff]  ;;  %v801_v39 = vld [vmem:[%s2030_s11 + $0x98] sm:$0xff]  ;;  %v451_v41 = vld [vmem:[%s2050_s23 + $0x28] sm:$0xff]  ;;  %s2309_s18 = scalar_lea.vmem %s2383_s7, %s1569_s19 }
  0x3c   : > { %583 = vmatprep.mubr.f32.mxu0 %v1892_v1  ;;  %1662 = vmatprep.subr.bf16.mxu1 %v1661_v28  ;;  %v794_v36 = vld [vmem:[%s2030_s11 + $0x60] sm:$0xff]  ;;  %v1669_v42 = vpack.c.bf16 %v801_v39, %v799_v38  ;;  %v800_v44 = vld [vmem:[%s2030_s11 + $0x90] sm:$0xff]  ;;  %v803_v45 = vld [vmem:[%s2030_s11 + $0xa8] sm:$0xff] }
  0x3d   : > { %v1667_v40 = vpack.c.bf16 %v796_v37, %v794_v36  ;;  %v798_v43 = vld [vmem:[%s2030_s11 + $0x80] sm:$0xff]  ;;  %v805_v46 = vld [vmem:[%s2030_s11 + $0xb8] sm:$0xff]  ;;  %v452_v48 = vld [vmem:[%s2050_s23 + $0x30] sm:$0xff] }
  0x3e   : > { %v1671_v47 = vpack.c.bf16 %v800_v44, %v798_v43  ;;  %v1673_v49 = vpack.c.bf16 %v805_v46, %v803_v45  ;;  %v802_v50 = vld [vmem:[%s2030_s11 + $0xa0] sm:$0xff]  ;;  %v804_v51 = vld [vmem:[%s2030_s11 + $0xb0] sm:$0xff]  ;;  %v807_v52 = vld [vmem:[%s2030_s11 + $0xc8] sm:$0xff] }
  0x3f   : > { %1550 = vmatmul.mubr.msk.f32.gmra.mrb[2].mxu0 %vm464_vm0, %v447_v11  ;;  %1664 = vmatpush1.bf16.msra.mxu1 %v1663_v33  ;;  %v809_v53 = vld [vmem:[%s2030_s11 + $0xd8] sm:$0xff]  ;;  %v1675_v54 = vpack.c.bf16 %v804_v51, %v802_v50  ;;  %v806_v57 = vld [vmem:[%s2030_s11 + $0xc0] sm:$0xff]  ;;  %v808_v58 = vld [vmem:[%s2030_s11 + $0xd0] sm:$0xff] }
  0x40   : > { %589 = vmatprep.mubr.f32.mxu0 %v1892_v1  ;;  %1666 = vmatprep.subr.bf16.mxu1 %v1665_v35  ;;  %v453_v55 = vld [vmem:[%s2050_s23 + $0x38] sm:$0xff]  ;;  %v1677_v56 = vpack.c.bf16 %v809_v53, %v807_v52  ;;  %v811_v59 = vld [vmem:[%s2030_s11 + $0xe8] sm:$0xff]  ;;  %v1679_v61 = vpack.c.bf16 %v808_v58, %v806_v57  ;;  %v454_v62 = vld [vmem:[%s2050_s23 + $0x40] sm:$0xff] }
  0x41   : > { %v813_v60 = vld [vmem:[%s2030_s11 + $0xf8] sm:$0xff]  ;;  %v810_v0 = vld [vmem:[%s2030_s11 + $0xe0] sm:$0xff]  ;;  %v812_v3 = vld [vmem:[%s2030_s11 + $0xf0] sm:$0xff] }
  0x42   : > { %v1681_v63 = vpack.c.bf16 %v813_v60, %v811_v59  ;;  %v815_v6 = vld [vmem:[%s2030_s11 + $0x108] sm:$0xff]  ;;  %v817_v7 = vld [vmem:[%s2030_s11 + $0x118] sm:$0xff]  ;;  %v1683_v8 = vpack.c.bf16 %v812_v3, %v810_v0  ;;  %v814_v13 = vld [vmem:[%s2030_s11 + $0x100] sm:$0xff] }
  0x43   : > { %1551 = vmatmul.mubr.msk.f32.gmra.mrb[4].mxu0 %vm464_vm0, %v448_v12  ;;  %1668 = vmatpush1.bf16.msra.mxu1 %v1667_v40  ;;  %v455_v11 = vld [vmem:[%s2050_s23 + $0x48] sm:$0xff]  ;;  %v1685_v12 = vpack.c.bf16 %v817_v7, %v815_v6  ;;  %v816_v14 = vld [vmem:[%s2030_s11 + $0x110] sm:$0xff]  ;;  %v821_v16 = vld [vmem:[%s2030_s11 + $0x138] sm:$0xff] }
  0x44   : > { %595 = vmatprep.mubr.f32.mxu0 %v1892_v1  ;;  %1670 = vmatprep.subr.bf16.mxu1 %v1669_v42  ;;  %v819_v15 = vld [vmem:[%s2030_s11 + $0x128] sm:$0xff]  ;;  %v1687_v17 = vpack.c.bf16 %v816_v14, %v814_v13  ;;  %v456_v18 = vld [vmem:[%s2050_s23 + $0x50] sm:$0xff]  ;;  %v818_v20 = vld [vmem:[%s2030_s11 + $0x120] sm:$0xff] }
  0x45   : > { %v1689_v19 = vpack.c.bf16 %v821_v16, %v819_v15  ;;  %v820_v21 = vld [vmem:[%s2030_s11 + $0x130] sm:$0xff]  ;;  %v823_v22 = vld [vmem:[%s2030_s11 + $0x148] sm:$0xff]  ;;  %v825_v23 = vld [vmem:[%s2030_s11 + $0x158] sm:$0xff] }
  0x46   : > { %v1691_v24 = vpack.c.bf16 %v820_v21, %v818_v20  ;;  %v457_v25 = vld [vmem:[%s2050_s23 + $0x58] sm:$0xff]  ;;  %v1693_v26 = vpack.c.bf16 %v825_v23, %v823_v22  ;;  %v824_v28 = vld [vmem:[%s2030_s11 + $0x150] sm:$0xff]  ;;  %v827_v29 = vld [vmem:[%s2030_s11 + $0x168] sm:$0xff] }
  0x47   : > { %1552 = vmatmul.mubr.msk.f32.gmra.mrb[6].mxu0 %vm464_vm0, %v449_v27  ;;  %1672 = vmatpush1.bf16.msra.mxu1 %v1671_v47  ;;  %v822_v27 = vld [vmem:[%s2030_s11 + $0x140] sm:$0xff]  ;;  %v829_v30 = vld [vmem:[%s2030_s11 + $0x178] sm:$0xff]  ;;  %v828_v35 = vld [vmem:[%s2030_s11 + $0x170] sm:$0xff] }
  0x48   : > { %601 = vmatprep.mubr.f32.mxu0 %v1892_v1  ;;  %1674 = vmatprep.subr.bf16.mxu1 %v1673_v49  ;;  %v1695_v31 = vpack.c.bf16 %v824_v28, %v822_v27  ;;  %v458_v32 = vld [vmem:[%s2050_s23 + $0x60] sm:$0xff]  ;;  %v1697_v33 = vpack.c.bf16 %v829_v30, %v827_v29  ;;  %v831_v36 = vld [vmem:[%s2030_s11 + $0x188] sm:$0xff]  ;;  %v833_v37 = vld [vmem:[%s2030_s11 + $0x198] sm:$0xff] }
  0x49   : > { %v459_v39 = vld [vmem:[%s2050_s23 + $0x68] sm:$0xff]  ;;  %v1701_v40 = vpack.c.bf16 %v833_v37, %v831_v36  ;;  %v832_v42 = vld [vmem:[%s2030_s11 + $0x190] sm:$0xff]  ;;  %v837_v44 = vld [vmem:[%s2030_s11 + $0x1b8] sm:$0xff] }
  0x4a   : > { %v835_v43 = vld [vmem:[%s2030_s11 + $0x1a8] sm:$0xff]  ;;  %v460_v46 = vld [vmem:[%s2050_s23 + $0x70] sm:$0xff]  ;;  %v461_v51 = vld [vmem:[%s2050_s23 + $0x78] sm:$0xff] }
  0x4b   : > { %1553 = vmatmul.mubr.msk.f32.gmra.mrb[8].mxu0 %vm464_vm0, %v450_v34  ;;  %1676 = vmatpush1.bf16.msra.mxu1 %v1675_v54  ;;  %v826_v34 = vld [vmem:[%s2030_s11 + $0x160] sm:$0xff]  ;;  %v1705_v47 = vpack.c.bf16 %v837_v44, %v835_v43  ;;  %v836_v49 = vld [vmem:[%s2030_s11 + $0x1b0] sm:$0xff]  ;;  %v839_v52 = vld [vmem:[%s2030_s11 + $0x1c8] sm:$0xff] }
  0x4c   : > { %607 = vmatprep.mubr.f32.mxu0 %v1892_v1  ;;  %1678 = vmatprep.subr.bf16.mxu1 %v1677_v56  ;;  %v1699_v38 = vpack.c.bf16 %v828_v35, %v826_v34  ;;  %v841_v53 = vld [vmem:[%s2030_s11 + $0x1d8] sm:$0xff]  ;;  %v840_v56 = vld [vmem:[%s2030_s11 + $0x1d0] sm:$0xff]  ;;  %v843_v58 = vld [vmem:[%s2030_s11 + $0x1e8] sm:$0xff] }
  0x4d   : > { %v1709_v54 = vpack.c.bf16 %v841_v53, %v839_v52  ;;  %v845_v59 = vld [vmem:[%s2030_s11 + $0x1f8] sm:$0xff]  ;;  %v1132_v0 = vld [vmem:[%s2186_s21 + $0x88] sm:$0xff]  ;;  %v1115_v3 = vld [vmem:[%s2186_s21] sm:$0xff] }
  0x4e   : > { %v1713_v60 = vpack.c.bf16 %v845_v59, %v843_v58  ;;  %v1116_v7 = vld [vmem:[%s2186_s21 + $0x8] sm:$0xff]  ;;  %v1117_v14 = vld [vmem:[%s2186_s21 + $0x10] sm:$0xff]  ;;  %v1118_v15 = vld [vmem:[%s2186_s21 + $0x18] sm:$0xff] }
  0x4f   : > { %1554 = vmatmul.mubr.msk.f32.gmra.mrb[10].mxu0 %vm464_vm0, %v451_v41  ;;  %1680 = vmatpush1.bf16.msra.mxu1 %v1679_v61  ;;  %v830_v41 = vld [vmem:[%s2030_s11 + $0x180] sm:$0xff]  ;;  %v844_v61 = vld [vmem:[%s2030_s11 + $0x1f0] sm:$0xff]  ;;  %v1120_v21 = vld [vmem:[%s2186_s21 + $0x28] sm:$0xff] }
  0x50   : > { %613 = vmatprep.mubr.f32.mxu0 %v1892_v1  ;;  %1682 = vmatprep.subr.bf16.mxu1 %v1681_v63  ;;  %v1703_v45 = vpack.c.bf16 %v832_v42, %v830_v41  ;;  %v1131_v63 = vld [vmem:[%s2186_s21 + $0x80] sm:$0xff]  ;;  %v1137_v22 = vld [vmem:[%s2186_s21 + $0xb0] sm:$0xff]  ;;  %v1138_v23 = vld [vmem:[%s2186_s21 + $0xb8] sm:$0xff] }
  0x51   : > { %v1717_v6 = vpack.c.bf16 %v1132_v0, %v1131_v63  ;;  %v1135_v16 = vld [vmem:[%s2186_s21 + $0xa0] sm:$0xff]  ;;  %v1122_v27 = vld [vmem:[%s2186_s21 + $0x38] sm:$0xff]  ;;  %v1140_v29 = vld [vmem:[%s2186_s21 + $0xc8] sm:$0xff] }
  0x52   : > { %v1119_v20 = vld [vmem:[%s2186_s21 + $0x20] sm:$0xff]  ;;  %v1141_v34 = vld [vmem:[%s2186_s21 + $0xd0] sm:$0xff]  ;;  %v1142_v35 = vld [vmem:[%s2186_s21 + $0xd8] sm:$0xff] }
  0x53   : > { %1555 = vmatmul.mubr.msk.f32.gmra.mrb[12].mxu0 %vm464_vm0, %v452_v48  ;;  %1684 = vmatpush1.bf16.msra.mxu1 %v1683_v8  ;;  %v834_v48 = vld [vmem:[%s2030_s11 + $0x1a0] sm:$0xff]  ;;  %v1133_v8 = vld [vmem:[%s2186_s21 + $0x90] sm:$0xff]  ;;  %v1737_v37 = vpack.c.bf16 %v1142_v35, %v1141_v34  ;;  %v1144_v41 = vld [vmem:[%s2186_s21 + $0xe8] sm:$0xff] }
  0x54   : > { %619 = vmatprep.mubr.f32.mxu0 %v1892_v1  ;;  %1686 = vmatprep.subr.bf16.mxu1 %v1685_v12  ;;  %v1707_v50 = vpack.c.bf16 %v836_v49, %v834_v48  ;;  %v1719_v12 = vpack.c.bf16 %v1116_v7, %v1115_v3  ;;  %v1139_v28 = vld [vmem:[%s2186_s21 + $0xc0] sm:$0xff] }
  0x55   : > { %1718 = vmatprep.subr.bf16.mxu0 %v1717_v6  ;;  %v1127_v44 = vld [vmem:[%s2186_s21 + $0x60] sm:$0xff] }
  0x56   : > { %1720 = vmatpush3.bf16.msra.mxu0 %v1719_v12 }
  0x57   : > { %1556 = vmatmul.mubr.msk.f32.gmra.mrb[14].mxu0 %vm464_vm0, %v453_v55  ;;  %1688 = vmatpush1.bf16.msra.mxu1 %v1687_v17  ;;  %v838_v55 = vld [vmem:[%s2030_s11 + $0x1c0] sm:$0xff]  ;;  %v1136_v17 = vld [vmem:[%s2186_s21 + $0xa8] sm:$0xff] }
  0x58   : > { %625 = vmatprep.mubr.f32.mxu0 %v1892_v1  ;;  %1690 = vmatprep.subr.bf16.mxu1 %v1689_v19  ;;  %v1711_v57 = vpack.c.bf16 %v840_v56, %v838_v55  ;;  %v1725_v19 = vpack.c.bf16 %v1136_v17, %v1135_v16 }
  0x5b   : > { %1557 = vmatmul.mubr.msk.f32.gmra.mrb[16].mxu0 %vm464_vm0, %v454_v62  ;;  %1692 = vmatpush1.bf16.msra.mxu1 %v1691_v24  ;;  %v1727_v24 = vpack.c.bf16 %v1120_v21, %v1119_v20 }
  0x5c   : > { %631 = vmatprep.mubr.f32.mxu0 %v1892_v1  ;;  %1694 = vmatprep.subr.bf16.mxu1 %v1693_v26  ;;  %v1121_v26 = vld [vmem:[%s2186_s21 + $0x30] sm:$0xff] }
  0x5d   : > { %v1731_v30 = vpack.c.bf16 %v1122_v27, %v1121_v26 }
  0x5f   : > { %1558 = vmatmul.mubr.msk.f32.gmra.mrb[18].mxu0 %vm464_vm0, %v455_v11  ;;  %1696 = vmatpush1.bf16.msra.mxu1 %v1695_v31  ;;  %v1134_v11 = vld [vmem:[%s2186_s21 + $0x98] sm:$0xff]  ;;  %v1733_v31 = vpack.c.bf16 %v1140_v29, %v1139_v28 }
  0x60   : > { %637 = vmatprep.mubr.f32.mxu0 %v1892_v1  ;;  %1698 = vmatprep.subr.bf16.mxu1 %v1697_v33  ;;  %v1721_v13 = vpack.c.bf16 %v1134_v11, %v1133_v8  ;;  %v1124_v33 = vld [vmem:[%s2186_s21 + $0x48] sm:$0xff] }
  0x62   : > { %1722 = vmatprep.subr.bf16.mxu0 %v1721_v13 }
  0x63   : > { %1559 = vmatmul.mubr.msk.f32.gmra.mrb[20].mxu0 %vm464_vm0, %v456_v18  ;;  %1700 = vmatpush1.bf16.msra.mxu1 %v1699_v38  ;;  %v1723_v18 = vpack.c.bf16 %v1118_v15, %v1117_v14  ;;  %v1125_v38 = vld [vmem:[%s2186_s21 + $0x50] sm:$0xff] }
  0x64   : > { %643 = vmatprep.mubr.f32.mxu0 %v1892_v1  ;;  %1702 = vmatprep.subr.bf16.mxu1 %v1701_v40  ;;  %v1143_v40 = vld [vmem:[%s2186_s21 + $0xe0] sm:$0xff] }
  0x65   : > { %1724 = vmatpush3.bf16.msra.mxu0 %v1723_v18  ;;  %v1741_v43 = vpack.c.bf16 %v1144_v41, %v1143_v40 }
  0x66   : > { %1726 = vmatprep.subr.bf16.mxu0 %v1725_v19 }
  0x67   : > { %1560 = vmatmul.mubr.msk.f32.gmra.mrb[22].mxu0 %vm464_vm0, %v457_v25  ;;  %1704 = vmatpush1.bf16.msra.mxu1 %v1703_v45  ;;  %v1729_v25 = vpack.c.bf16 %v1138_v23, %v1137_v22  ;;  %v1128_v45 = vld [vmem:[%s2186_s21 + $0x68] sm:$0xff] }
  0x68   : > { %649 = vmatprep.mubr.f32.mxu0 %v1892_v1  ;;  %1706 = vmatprep.subr.bf16.mxu1 %v1705_v47  ;;  %v674_v47 = vld [vmem:[%s423_s22] sm:$0x3] }
  0x69   : > { %1728 = vmatpush3.bf16.msra.mxu0 %v1727_v24  ;;  %v2223_v48 = vrot.slane %v674_v47, %v678_v4  ;;  %v2227_v49 = vrot.slane %v674_v47, %v682_v5 }
  0x6a   : > { %1730 = vmatprep.subr.bf16.mxu0 %v1729_v25 }
  0x6b   : > { %1561 = vmatmul.mubr.msk.f32.gmra.mrb[24].mxu0 %vm464_vm0, %v458_v32  ;;  %1708 = vmatpush1.bf16.msra.mxu1 %v1707_v50  ;;  %v1123_v32 = vld [vmem:[%s2186_s21 + $0x40] sm:$0xff] }
  0x6c   : > { %655 = vmatprep.mubr.f32.mxu0 %v1892_v1  ;;  %1710 = vmatprep.subr.bf16.mxu1 %v1709_v54  ;;  %v1735_v36 = vpack.c.bf16 %v1124_v33, %v1123_v32 }
  0x6d   : > { %1732 = vmatpush3.bf16.msra.mxu0 %v1731_v30 }
  0x6e   : > { %1734 = vmatprep.subr.bf16.mxu0 %v1733_v31 }
  0x6f   : > { %1562 = vmatmul.mubr.msk.f32.gmra.mrb[26].mxu0 %vm464_vm0, %v459_v39  ;;  %1712 = vmatpush1.bf16.msra.mxu1 %v1711_v57  ;;  %v1126_v39 = vld [vmem:[%s2186_s21 + $0x58] sm:$0xff] }
  0x70   : > { %661 = vmatprep.mubr.f32.mxu0 %v1892_v1  ;;  %1714 = vmatprep.subr.bf16.mxu1 %v1713_v60  ;;  %v1739_v42 = vpack.c.bf16 %v1126_v39, %v1125_v38 }
  0x71   : > { %1736 = vmatpush3.bf16.msra.mxu0 %v1735_v36 }
  0x72   : > { %1738 = vmatprep.subr.bf16.mxu0 %v1737_v37 }
  0x73   : > { %1563 = vmatmul.mubr.msk.f32.gmra.mrb[28].mxu0 %vm464_vm0, %v460_v46  ;;  %v1743_v46 = vpack.c.bf16 %v1128_v45, %v1127_v44 }
  0x74   : > { %667 = vmatprep.mubr.f32.mxu0 %v1892_v1  ;;  %v842_v1 = vld [vmem:[%s2030_s11 + $0x1e0] sm:$0xff] }
  0x75   : > { %v1715_v62 = vpack.c.bf16 %v844_v61, %v842_v1  ;;  %1740 = vmatpush3.bf16.msra.mxu0 %v1739_v42 }
  0x76   : > { %1742 = vmatprep.subr.bf16.mxu0 %v1741_v43 }
  0x77   : > { %1564 = vmatmul.mubr.msk.f32.gmra.mrb[30].mxu0 %vm464_vm0, %v461_v51  ;;  %1716 = vmatpush1.bf16.msra.mxu1 %v1715_v62 }
  0x79   : > { %1744 = vmatpush3.bf16.msra.mxu0 %v1743_v46 }
 0x10e   : > { %v579_v50 = vpop.f32.mrb[0].mxu0 }
 0x10f   : > { %v686_v51 = vsub.f32 %v579_v50, %v2223_v48  ;;  %v581_v52 = vpop.f32.mrb[1].mxu0 }
 0x110   : > { %v687_v53 = vsub.f32 %v581_v52, %v2227_v49 }
 0x111   : > { %v718_v54 = vmax.f32 %v686_v51, 0.0 }
 0x112   : > { %v585_v55 = vpop.f32.mrb[2].mxu0  ;;  %v719_v56 = vmax.f32 %v687_v53, 0.0 }
 0x113   : > { %v688_v57 = vsub.f32 %v585_v55, %v2223_v48  ;;  %v587_v58 = vpop.f32.mrb[3].mxu0  ;;  %v750_v60 = vmin.f32 %v718_v54, 1.0 }
 0x114   : > { %v689_v59 = vsub.f32 %v587_v58, %v2227_v49  ;;  %v751_v4 = vmin.f32 %v719_v56, 1.0 }
 0x115   : > { %v720_v1 = vmax.f32 %v688_v57, 0.0 }
 0x116   : > { %v721_v2 = vmax.f32 %v689_v59, 0.0  ;;  %v591_v5 = vpop.f32.mrb[4].mxu0  ;;  %910 = vmatprep.mubr.f32.mxu1 %v751_v4 }
 0x117   : > { %v690_v61 = vsub.f32 %v591_v5, %v2223_v48  ;;  %v593_v62 = vpop.f32.mrb[5].mxu0  ;;  %911 = vmatmul.mubr.f32.vlgmr.msra.gmra.mrb[0].mxu1 %v750_v60  ;;  %v752_v3 = vmin.f32 %v720_v1, 1.0 }
 0x118   : > { %v753_v63 = vmin.f32 %v721_v2, 1.0  ;;  %v691_v0 = vsub.f32 %v593_v62, %v2227_v49 }
 0x119   : > { %v722_v6 = vmax.f32 %v690_v61, 0.0 }
 0x11a   : > { %v723_v7 = vmax.f32 %v691_v0, 0.0  ;;  %v597_v8 = vpop.f32.mrb[6].mxu0  ;;  %916 = vmatprep.mubr.f32.mxu1 %v753_v63 }
 0x11b   : > { %v692_v11 = vsub.f32 %v597_v8, %v2223_v48  ;;  %v599_v12 = vpop.f32.mrb[7].mxu0  ;;  %917 = vmatmul.mubr.f32.gmra.mrb[2].mxu1 %v752_v3  ;;  %v754_v15 = vmin.f32 %v722_v6, 1.0 }
 0x11c   : > { %v755_v13 = vmin.f32 %v723_v7, 1.0  ;;  %v693_v14 = vsub.f32 %v599_v12, %v2227_v49 }
 0x11d   : > { %v724_v16 = vmax.f32 %v692_v11, 0.0 }
 0x11e   : > { %v725_v17 = vmax.f32 %v693_v14, 0.0  ;;  %v603_v18 = vpop.f32.mrb[8].mxu0  ;;  %922 = vmatprep.mubr.f32.mxu1 %v755_v13 }
 0x11f   : > { %v694_v19 = vsub.f32 %v603_v18, %v2223_v48  ;;  %v605_v20 = vpop.f32.mrb[9].mxu0  ;;  %923 = vmatmul.mubr.f32.gmra.mrb[4].mxu1 %v754_v15  ;;  %v756_v23 = vmin.f32 %v724_v16, 1.0 }
 0x120   : > { %v757_v21 = vmin.f32 %v725_v17, 1.0  ;;  %v695_v22 = vsub.f32 %v605_v20, %v2227_v49 }
 0x121   : > { %v726_v24 = vmax.f32 %v694_v19, 0.0 }
 0x122   : > { %v727_v25 = vmax.f32 %v695_v22, 0.0  ;;  %v609_v26 = vpop.f32.mrb[10].mxu0  ;;  %928 = vmatprep.mubr.f32.mxu1 %v757_v21 }
 0x123   : > { %v696_v27 = vsub.f32 %v609_v26, %v2223_v48  ;;  %v611_v28 = vpop.f32.mrb[11].mxu0  ;;  %929 = vmatmul.mubr.f32.gmra.mrb[6].mxu1 %v756_v23  ;;  %v758_v31 = vmin.f32 %v726_v24, 1.0 }
 0x124   : > { %v759_v29 = vmin.f32 %v727_v25, 1.0  ;;  %v697_v30 = vsub.f32 %v611_v28, %v2227_v49 }
 0x125   : > { %v728_v32 = vmax.f32 %v696_v27, 0.0 }
 0x126   : > { %v729_v33 = vmax.f32 %v697_v30, 0.0  ;;  %v615_v34 = vpop.f32.mrb[12].mxu0  ;;  %934 = vmatprep.mubr.f32.mxu1 %v759_v29 }
 0x127   : > { %v698_v35 = vsub.f32 %v615_v34, %v2223_v48  ;;  %v617_v36 = vpop.f32.mrb[13].mxu0  ;;  %935 = vmatmul.mubr.f32.gmra.mrb[8].mxu1 %v758_v31  ;;  %v760_v39 = vmin.f32 %v728_v32, 1.0 }
 0x128   : > { %v761_v37 = vmin.f32 %v729_v33, 1.0  ;;  %v699_v38 = vsub.f32 %v617_v36, %v2227_v49 }
 0x129   : > { %v730_v40 = vmax.f32 %v698_v35, 0.0 }
 0x12a   : > { %v731_v41 = vmax.f32 %v699_v38, 0.0  ;;  %v621_v42 = vpop.f32.mrb[14].mxu0  ;;  %940 = vmatprep.mubr.f32.mxu1 %v761_v37 }
 0x12b   : > { %v700_v43 = vsub.f32 %v621_v42, %v2223_v48  ;;  %v623_v44 = vpop.f32.mrb[15].mxu0  ;;  %941 = vmatmul.mubr.f32.gmra.mrb[10].mxu1 %v760_v39  ;;  %v762_v47 = vmin.f32 %v730_v40, 1.0 }
 0x12c   : > { %v763_v45 = vmin.f32 %v731_v41, 1.0  ;;  %v701_v46 = vsub.f32 %v623_v44, %v2227_v49 }
 0x12d   : > { %v732_v50 = vmax.f32 %v700_v43, 0.0 }
 0x12e   : > { %v733_v51 = vmax.f32 %v701_v46, 0.0  ;;  %v627_v52 = vpop.f32.mrb[16].mxu0  ;;  %946 = vmatprep.mubr.f32.mxu1 %v763_v45 }
 0x12f   : > { %v702_v53 = vsub.f32 %v627_v52, %v2223_v48  ;;  %v629_v54 = vpop.f32.mrb[17].mxu0  ;;  %947 = vmatmul.mubr.f32.gmra.mrb[12].mxu1 %v762_v47  ;;  %v764_v57 = vmin.f32 %v732_v50, 1.0 }
 0x130   : > { %v765_v55 = vmin.f32 %v733_v51, 1.0  ;;  %v703_v56 = vsub.f32 %v629_v54, %v2227_v49 }
 0x131   : > { %v734_v58 = vmax.f32 %v702_v53, 0.0 }
 0x132   : > { %v735_v59 = vmax.f32 %v703_v56, 0.0  ;;  %v633_v4 = vpop.f32.mrb[18].mxu0  ;;  %952 = vmatprep.mubr.f32.mxu1 %v765_v55 }
 0x133   : > { %v704_v60 = vsub.f32 %v633_v4, %v2223_v48  ;;  %v635_v1 = vpop.f32.mrb[19].mxu0  ;;  %953 = vmatmul.mubr.f32.gmra.mrb[14].mxu1 %v764_v57  ;;  %v766_v61 = vmin.f32 %v734_v58, 1.0  ;;  %v1145_v58 = vld [vmem:[%s2186_s21 + $0xf0] sm:$0xff] }
 0x134   : > { %v767_v2 = vmin.f32 %v735_v59, 1.0  ;;  %v705_v5 = vsub.f32 %v635_v1, %v2227_v49  ;;  %v1146_v59 = vld [vmem:[%s2186_s21 + $0xf8] sm:$0xff] }
 0x135   : > { %v736_v62 = vmax.f32 %v704_v60, 0.0  ;;  %v1745_v4 = vpack.c.bf16 %v1146_v59, %v1145_v58  ;;  %v1130_v60 = vld [vmem:[%s2186_s21 + $0x78] sm:$0xff] }
 0x136   : > { %v737_v63 = vmax.f32 %v705_v5, 0.0  ;;  %v639_v0 = vpop.f32.mrb[20].mxu0  ;;  %958 = vmatprep.mubr.f32.mxu1 %v767_v2 }
 0x137   : > { %v706_v3 = vsub.f32 %v639_v0, %v2223_v48  ;;  %v641_v6 = vpop.f32.mrb[21].mxu0  ;;  %959 = vmatmul.mubr.f32.gmra.mrb[16].mxu1 %v766_v61  ;;  %v768_v11 = vmin.f32 %v736_v62, 1.0  ;;  %1746 = vmatprep.subr.bf16.mxu0 %v1745_v4 }
 0x138   : > { %v769_v7 = vmin.f32 %v737_v63, 1.0  ;;  %v707_v8 = vsub.f32 %v641_v6, %v2227_v49 }
 0x139   : > { %v738_v12 = vmax.f32 %v706_v3, 0.0 }
 0x13a   : > { %v739_v13 = vmax.f32 %v707_v8, 0.0  ;;  %v645_v14 = vpop.f32.mrb[22].mxu0  ;;  %964 = vmatprep.mubr.f32.mxu1 %v769_v7 }
 0x13b   : > { %v708_v15 = vsub.f32 %v645_v14, %v2223_v48  ;;  %v647_v16 = vpop.f32.mrb[23].mxu0  ;;  %965 = vmatmul.mubr.f32.gmra.mrb[18].mxu1 %v768_v11  ;;  %v770_v19 = vmin.f32 %v738_v12, 1.0 }
 0x13c   : > { %v771_v17 = vmin.f32 %v739_v13, 1.0  ;;  %v709_v18 = vsub.f32 %v647_v16, %v2227_v49 }
 0x13d   : > { %v740_v20 = vmax.f32 %v708_v15, 0.0 }
 0x13e   : > { %v741_v21 = vmax.f32 %v709_v18, 0.0  ;;  %v651_v22 = vpop.f32.mrb[24].mxu0  ;;  %970 = vmatprep.mubr.f32.mxu1 %v771_v17 }
 0x13f   : > { %v710_v23 = vsub.f32 %v651_v22, %v2223_v48  ;;  %v653_v24 = vpop.f32.mrb[25].mxu0  ;;  %971 = vmatmul.mubr.f32.gmra.mrb[20].mxu1 %v770_v19  ;;  %v772_v27 = vmin.f32 %v740_v20, 1.0 }
 0x140   : > { %v773_v25 = vmin.f32 %v741_v21, 1.0  ;;  %v711_v26 = vsub.f32 %v653_v24, %v2227_v49 }
 0x141   : > { %v742_v28 = vmax.f32 %v710_v23, 0.0 }
 0x142   : > { %v743_v29 = vmax.f32 %v711_v26, 0.0  ;;  %v657_v30 = vpop.f32.mrb[26].mxu0  ;;  %976 = vmatprep.mubr.f32.mxu1 %v773_v25 }
 0x143   : > { %v712_v31 = vsub.f32 %v657_v30, %v2223_v48  ;;  %v659_v32 = vpop.f32.mrb[27].mxu0  ;;  %977 = vmatmul.mubr.f32.gmra.mrb[22].mxu1 %v772_v27  ;;  %v774_v35 = vmin.f32 %v742_v28, 1.0 }
 0x144   : > { %v775_v33 = vmin.f32 %v743_v29, 1.0  ;;  %v713_v34 = vsub.f32 %v659_v32, %v2227_v49 }
 0x145   : > { %v744_v36 = vmax.f32 %v712_v31, 0.0 }
 0x146   : > { %v745_v37 = vmax.f32 %v713_v34, 0.0  ;;  %v663_v38 = vpop.f32.mrb[28].mxu0  ;;  %982 = vmatprep.mubr.f32.mxu1 %v775_v33 }
 0x147   : > { %v714_v39 = vsub.f32 %v663_v38, %v2223_v48  ;;  %v665_v40 = vpop.f32.mrb[29].mxu0  ;;  %983 = vmatmul.mubr.f32.gmra.mrb[24].mxu1 %v774_v35  ;;  %v776_v43 = vmin.f32 %v744_v36, 1.0 }
 0x148   : > { %v777_v41 = vmin.f32 %v745_v37, 1.0  ;;  %v715_v42 = vsub.f32 %v665_v40, %v2227_v49 }
 0x149   : > { %v746_v44 = vmax.f32 %v714_v39, 0.0 }
 0x14a   : > { %v747_v45 = vmax.f32 %v715_v42, 0.0  ;;  %v669_v46 = vpop.f32.mrb[30].mxu0  ;;  %988 = vmatprep.mubr.f32.mxu1 %v777_v41 }
 0x14b   : > { %v716_v47 = vsub.f32 %v669_v46, %v2223_v48  ;;  %v671_v50 = vpop.f32.mrb[31].mxu0  ;;  %989 = vmatmul.mubr.f32.gmra.mrb[26].mxu1 %v776_v43  ;;  %v778_v53 = vmin.f32 %v746_v44, 1.0  ;;  %v1129_v48 = vld [vmem:[%s2186_s21 + $0x70] sm:$0xff] }
 0x14c   : > { %v779_v51 = vmin.f32 %v747_v45, 1.0  ;;  %v717_v52 = vsub.f32 %v671_v50, %v2227_v49  ;;  %v1747_v1 = vpack.c.bf16 %v1130_v60, %v1129_v48 }
 0x14d   : > { %v748_v54 = vmax.f32 %v716_v47, 0.0 }
 0x14e   : > { %v749_v55 = vmax.f32 %v717_v52, 0.0  ;;  %994 = vmatprep.mubr.f32.mxu1 %v779_v51  ;;  %1748 = vmatpush3.bf16.msra.mxu0 %v1747_v1 }
 0x14f   : > { %995 = vmatmul.mubr.f32.gmra.mrb[28].mxu1 %v778_v53  ;;  %v780_v57 = vmin.f32 %v748_v54, 1.0 }
 0x150   : > { %v781_v56 = vmin.f32 %v749_v55, 1.0 }
 0x152   : > { %1000 = vmatprep.mubr.f32.mxu1 %v781_v56 }
 0x153   : > { %1001 = vmatmul.mubr.f32.gmra.mrb[30].mxu1 %v780_v57 }
 0x1ea   : > { %v912_v2 = vpop.f32.mrb[0].mxu1 }
 0x1eb   : > { %v1019_v49 = vsub.f32 %v912_v2, %v2066_v9  ;;  %v914_v5 = vpop.f32.mrb[1].mxu1 }
 0x1ec   : > { %v1020_v61 = vsub.f32 %v914_v5, %v2070_v10 }
 0x1ed   : > { %v1051_v62 = vmax.f32 %v1019_v49, 0.0 }
 0x1ee   : > { %v1052_v63 = vmax.f32 %v1020_v61, 0.0  ;;  %v918_v0 = vpop.f32.mrb[2].mxu1 }
 0x1ef   : > { %v1021_v3 = vsub.f32 %v918_v0, %v2066_v9  ;;  %v920_v6 = vpop.f32.mrb[3].mxu1  ;;  %v1083_v11 = vmin.f32 %v1051_v62, 1.0 }
 0x1f0   : > { %v1084_v7 = vmin.f32 %v1052_v63, 1.0  ;;  %v1022_v8 = vsub.f32 %v920_v6, %v2070_v10 }
 0x1f1   : > { %v1053_v12 = vmax.f32 %v1021_v3, 0.0 }
 0x1f2   : > { %v1054_v13 = vmax.f32 %v1022_v8, 0.0  ;;  %v924_v14 = vpop.f32.mrb[4].mxu1  ;;  %1211 = vmatprep.mubr.f32.mxu0 %v1084_v7 }
 0x1f3   : > { %v1023_v15 = vsub.f32 %v924_v14, %v2066_v9  ;;  %v926_v16 = vpop.f32.mrb[5].mxu1  ;;  %1212 = vmatmul.mubr.f32.vlgmr.msra.gmra.mrb[32].mxu0 %v1083_v11  ;;  %v1085_v19 = vmin.f32 %v1053_v12, 1.0 }
 0x1f4   : > { %v1086_v17 = vmin.f32 %v1054_v13, 1.0  ;;  %v1024_v18 = vsub.f32 %v926_v16, %v2070_v10 }
 0x1f5   : > { %v1055_v20 = vmax.f32 %v1023_v15, 0.0 }
 0x1f6   : > { %v1056_v21 = vmax.f32 %v1024_v18, 0.0  ;;  %v930_v22 = vpop.f32.mrb[6].mxu1  ;;  %1216 = vmatprep.mubr.f32.mxu0 %v1086_v17 }
 0x1f7   : > { %v1025_v23 = vsub.f32 %v930_v22, %v2066_v9  ;;  %v932_v24 = vpop.f32.mrb[7].mxu1  ;;  %1217 = vmatmul.mubr.f32.gmra.mrb[34].mxu0 %v1085_v19  ;;  %v1087_v27 = vmin.f32 %v1055_v20, 1.0 }
 0x1f8   : > { %v1088_v25 = vmin.f32 %v1056_v21, 1.0  ;;  %v1026_v26 = vsub.f32 %v932_v24, %v2070_v10 }
 0x1f9   : > { %v1057_v28 = vmax.f32 %v1025_v23, 0.0 }
 0x1fa   : > { %v1058_v29 = vmax.f32 %v1026_v26, 0.0  ;;  %v936_v30 = vpop.f32.mrb[8].mxu1  ;;  %1221 = vmatprep.mubr.f32.mxu0 %v1088_v25 }
 0x1fb   : > { %v1027_v31 = vsub.f32 %v936_v30, %v2066_v9  ;;  %v938_v32 = vpop.f32.mrb[9].mxu1  ;;  %1222 = vmatmul.mubr.f32.gmra.mrb[36].mxu0 %v1087_v27  ;;  %v1089_v35 = vmin.f32 %v1057_v28, 1.0 }
 0x1fc   : > { %v1090_v33 = vmin.f32 %v1058_v29, 1.0  ;;  %v1028_v34 = vsub.f32 %v938_v32, %v2070_v10 }
 0x1fd   : > { %v1059_v36 = vmax.f32 %v1027_v31, 0.0 }
 0x1fe   : > { %v1060_v37 = vmax.f32 %v1028_v34, 0.0  ;;  %v942_v38 = vpop.f32.mrb[10].mxu1  ;;  %1226 = vmatprep.mubr.f32.mxu0 %v1090_v33 }
 0x1ff   : > { %v1029_v39 = vsub.f32 %v942_v38, %v2066_v9  ;;  %v944_v40 = vpop.f32.mrb[11].mxu1  ;;  %1227 = vmatmul.mubr.f32.gmra.mrb[38].mxu0 %v1089_v35  ;;  %v1091_v43 = vmin.f32 %v1059_v36, 1.0 }
 0x200   : > { %v1092_v41 = vmin.f32 %v1060_v37, 1.0  ;;  %v1030_v42 = vsub.f32 %v944_v40, %v2070_v10 }
 0x201   : > { %v1061_v44 = vmax.f32 %v1029_v39, 0.0 }
 0x202   : > { %v1062_v45 = vmax.f32 %v1030_v42, 0.0  ;;  %v948_v46 = vpop.f32.mrb[12].mxu1  ;;  %1231 = vmatprep.mubr.f32.mxu0 %v1092_v41 }
 0x203   : > { %v1031_v47 = vsub.f32 %v948_v46, %v2066_v9  ;;  %v950_v50 = vpop.f32.mrb[13].mxu1  ;;  %1232 = vmatmul.mubr.f32.gmra.mrb[40].mxu0 %v1091_v43  ;;  %v1093_v53 = vmin.f32 %v1061_v44, 1.0 }
 0x204   : > { %v1094_v51 = vmin.f32 %v1062_v45, 1.0  ;;  %v1032_v52 = vsub.f32 %v950_v50, %v2070_v10 }
 0x205   : > { %v1063_v54 = vmax.f32 %v1031_v47, 0.0 }
 0x206   : > { %v1064_v55 = vmax.f32 %v1032_v52, 0.0  ;;  %v954_v56 = vpop.f32.mrb[14].mxu1  ;;  %1236 = vmatprep.mubr.f32.mxu0 %v1094_v51 }
 0x207   : > { %v1033_v57 = vsub.f32 %v954_v56, %v2066_v9  ;;  %v956_v58 = vpop.f32.mrb[15].mxu1  ;;  %1237 = vmatmul.mubr.f32.gmra.mrb[42].mxu0 %v1093_v53  ;;  %v1095_v48 = vmin.f32 %v1063_v54, 1.0 }
 0x208   : > { %v1096_v59 = vmin.f32 %v1064_v55, 1.0  ;;  %v1034_v4 = vsub.f32 %v956_v58, %v2070_v10 }
 0x209   : > { %v1065_v60 = vmax.f32 %v1033_v57, 0.0 }
 0x20a   : > { %v1066_v1 = vmax.f32 %v1034_v4, 0.0  ;;  %v960_v2 = vpop.f32.mrb[16].mxu1  ;;  %1241 = vmatprep.mubr.f32.mxu0 %v1096_v59 }
 0x20b   : > { %v1035_v49 = vsub.f32 %v960_v2, %v2066_v9  ;;  %v962_v5 = vpop.f32.mrb[17].mxu1  ;;  %1242 = vmatmul.mubr.f32.gmra.mrb[44].mxu0 %v1095_v48  ;;  %v1097_v63 = vmin.f32 %v1065_v60, 1.0 }
 0x20c   : > { %v1098_v61 = vmin.f32 %v1066_v1, 1.0  ;;  %v1036_v62 = vsub.f32 %v962_v5, %v2070_v10 }
 0x20d   : > { %v1067_v0 = vmax.f32 %v1035_v49, 0.0 }
 0x20e   : > { %v1068_v3 = vmax.f32 %v1036_v62, 0.0  ;;  %v966_v6 = vpop.f32.mrb[18].mxu1  ;;  %1246 = vmatprep.mubr.f32.mxu0 %v1098_v61  ;;  %v2301_v62 = vld [vmem:[%s435_s14] ss:$0 sm:$0xff] }
 0x20f   : > { %v1037_v7 = vsub.f32 %v966_v6, %v2066_v9  ;;  %v968_v8 = vpop.f32.mrb[19].mxu1  ;;  %1247 = vmatmul.mubr.f32.gmra.mrb[46].mxu0 %v1097_v63  ;;  %v1099_v13 = vmin.f32 %v1067_v0, 1.0 }
 0x210   : > { %v1100_v11 = vmin.f32 %v1068_v3, 1.0  ;;  %v1038_v12 = vsub.f32 %v968_v8, %v2070_v10 }
 0x211   : > { %v1069_v14 = vmax.f32 %v1037_v7, 0.0 }
 0x212   : > { %v1070_v15 = vmax.f32 %v1038_v12, 0.0  ;;  %v972_v16 = vpop.f32.mrb[20].mxu1  ;;  %1251 = vmatprep.mubr.f32.mxu0 %v1100_v11 }
 0x213   : > { %v1039_v17 = vsub.f32 %v972_v16, %v2066_v9  ;;  %v974_v18 = vpop.f32.mrb[21].mxu1  ;;  %1252 = vmatmul.mubr.f32.gmra.mrb[48].mxu0 %v1099_v13  ;;  %v1101_v21 = vmin.f32 %v1069_v14, 1.0 }
 0x214   : > { %v1102_v19 = vmin.f32 %v1070_v15, 1.0  ;;  %v1040_v20 = vsub.f32 %v974_v18, %v2070_v10 }
 0x215   : > { %v1071_v22 = vmax.f32 %v1039_v17, 0.0 }
 0x216   : > { %v1072_v23 = vmax.f32 %v1040_v20, 0.0  ;;  %v978_v24 = vpop.f32.mrb[22].mxu1  ;;  %1256 = vmatprep.mubr.f32.mxu0 %v1102_v19 }
 0x217   : > { %v1041_v25 = vsub.f32 %v978_v24, %v2066_v9  ;;  %v980_v26 = vpop.f32.mrb[23].mxu1  ;;  %1257 = vmatmul.mubr.f32.gmra.mrb[50].mxu0 %v1101_v21  ;;  %v1103_v29 = vmin.f32 %v1071_v22, 1.0 }
 0x218   : > { %v1104_v27 = vmin.f32 %v1072_v23, 1.0  ;;  %v1042_v28 = vsub.f32 %v980_v26, %v2070_v10 }
 0x219   : > { %v1073_v30 = vmax.f32 %v1041_v25, 0.0 }
 0x21a   : > { %v1074_v31 = vmax.f32 %v1042_v28, 0.0  ;;  %v984_v32 = vpop.f32.mrb[24].mxu1  ;;  %1261 = vmatprep.mubr.f32.mxu0 %v1104_v27 }
 0x21b   : > { %v1043_v33 = vsub.f32 %v984_v32, %v2066_v9  ;;  %v986_v34 = vpop.f32.mrb[25].mxu1  ;;  %1262 = vmatmul.mubr.f32.gmra.mrb[52].mxu0 %v1103_v29  ;;  %v1105_v37 = vmin.f32 %v1073_v30, 1.0 }
 0x21c   : > { %v1106_v35 = vmin.f32 %v1074_v31, 1.0  ;;  %v1044_v36 = vsub.f32 %v986_v34, %v2070_v10 }
 0x21d   : > { %v1075_v38 = vmax.f32 %v1043_v33, 0.0 }
 0x21e   : > { %v1076_v39 = vmax.f32 %v1044_v36, 0.0  ;;  %v990_v40 = vpop.f32.mrb[26].mxu1  ;;  %1266 = vmatprep.mubr.f32.mxu0 %v1106_v35 }
 0x21f   : > { %v1045_v41 = vsub.f32 %v990_v40, %v2066_v9  ;;  %v992_v42 = vpop.f32.mrb[27].mxu1  ;;  %1267 = vmatmul.mubr.f32.gmra.mrb[54].mxu0 %v1105_v37  ;;  %v1107_v45 = vmin.f32 %v1075_v38, 1.0 }
 0x220   : > { %v1108_v43 = vmin.f32 %v1076_v39, 1.0  ;;  %v1046_v44 = vsub.f32 %v992_v42, %v2070_v10 }
 0x221   : > { %v1077_v46 = vmax.f32 %v1045_v41, 0.0 }
 0x222   : > { %v1078_v47 = vmax.f32 %v1046_v44, 0.0  ;;  %v996_v50 = vpop.f32.mrb[28].mxu1  ;;  %1271 = vmatprep.mubr.f32.mxu0 %v1108_v43 }
 0x223   : > { %v1047_v51 = vsub.f32 %v996_v50, %v2066_v9  ;;  %v998_v52 = vpop.f32.mrb[29].mxu1  ;;  %1272 = vmatmul.mubr.f32.gmra.mrb[56].mxu0 %v1107_v45  ;;  %v1109_v55 = vmin.f32 %v1077_v46, 1.0 }
 0x224   : > { %v1110_v53 = vmin.f32 %v1078_v47, 1.0  ;;  %v1048_v54 = vsub.f32 %v998_v52, %v2070_v10 }
 0x225   : > { %v1079_v56 = vmax.f32 %v1047_v51, 0.0 }
 0x226   : > { %v1080_v57 = vmax.f32 %v1048_v54, 0.0  ;;  %v1002_v58 = vpop.f32.mrb[30].mxu1  ;;  %1276 = vmatprep.mubr.f32.mxu0 %v1110_v53 }
 0x227   : > { %v1049_v59 = vsub.f32 %v1002_v58, %v2066_v9  ;;  %v1004_v4 = vpop.f32.mrb[31].mxu1  ;;  %1277 = vmatmul.mubr.f32.gmra.mrb[58].mxu0 %v1109_v55  ;;  %v1111_v1 = vmin.f32 %v1079_v56, 1.0 }
 0x228   : > { %v1112_v48 = vmin.f32 %v1080_v57, 1.0  ;;  %v1050_v60 = vsub.f32 %v1004_v4, %v2070_v10 }
 0x229   : > { %v1081_v2 = vmax.f32 %v1049_v59, 0.0 }
 0x22a   : > { %v1082_v49 = vmax.f32 %v1050_v60, 0.0  ;;  %1281 = vmatprep.mubr.f32.mxu0 %v1112_v48 }
 0x22b   : > { %1282 = vmatmul.mubr.f32.gmra.mrb[60].mxu0 %v1111_v1  ;;  %v1113_v61 = vmin.f32 %v1081_v2, 1.0 }
 0x22c   : > { %v1114_v5 = vmin.f32 %v1082_v49, 1.0 }
 0x22e   : > { %1286 = vmatprep.mubr.f32.mxu0 %v1114_v5 }
 0x22f   : > { %1287 = vmatmul.mubr.f32.gmra.mrb[62].mxu0 %v1113_v61 }
 0x2c6   : > { %v1605_v9 = vpop.f32.mrb[32].mxu0 }
 0x2c7   : > { %v1606_v63 = vpop.f32.mrb[33].mxu0 }
 0x2c8   : > { %v1607_v0 = vadd.f32 %v1606_v63, %v1605_v9 }
 0x2ca   : > { %v1299_v10 = vsub.f32 %v1607_v0, %v2301_v62  ;;  %v1608_v3 = vpop.f32.mrb[34].mxu0 }
 0x2cb   : > { %v1609_v6 = vpop.f32.mrb[35].mxu0 }
 0x2cc   : > { %v1315_v7 = vmax.f32 %v1299_v10, 0.0  ;;  %v1610_v8 = vadd.f32 %v1609_v6, %v1608_v3 }
 0x2ce   : > { %v1331_v11 = vmin.f32 %v1315_v7, 1.0  ;;  %v1300_v12 = vsub.f32 %v1610_v8, %v2301_v62  ;;  %v1611_v13 = vpop.f32.mrb[36].mxu0 }
 0x2cf   : > { %v1612_v14 = vpop.f32.mrb[37].mxu0 }
 0x2d0   : > { %1347 = vst.msk [vmem:[%s2309_s18] sm:$0xff] %vm464_vm0, %v1331_v11  ;;  %v1316_v15 = vmax.f32 %v1300_v12, 0.0  ;;  %v1613_v16 = vadd.f32 %v1612_v14, %v1611_v13 }
 0x2d2   : > { %v1332_v17 = vmin.f32 %v1316_v15, 1.0  ;;  %v1301_v18 = vsub.f32 %v1613_v16, %v2301_v62  ;;  %v1614_v19 = vpop.f32.mrb[38].mxu0 }
 0x2d3   : > { %v1615_v20 = vpop.f32.mrb[39].mxu0 }
 0x2d4   : > { %1348 = vst.msk [vmem:[%s2309_s18 + $0x8] sm:$0xff] %vm464_vm0, %v1332_v17  ;;  %v1317_v21 = vmax.f32 %v1301_v18, 0.0  ;;  %v1616_v22 = vadd.f32 %v1615_v20, %v1614_v19 }
 0x2d6   : > { %v1333_v23 = vmin.f32 %v1317_v21, 1.0  ;;  %v1302_v24 = vsub.f32 %v1616_v22, %v2301_v62  ;;  %v1617_v25 = vpop.f32.mrb[40].mxu0 }
 0x2d7   : > { %v1618_v26 = vpop.f32.mrb[41].mxu0 }
 0x2d8   : > { %1349 = vst.msk [vmem:[%s2309_s18 + $0x10] sm:$0xff] %vm464_vm0, %v1333_v23  ;;  %v1318_v27 = vmax.f32 %v1302_v24, 0.0  ;;  %v1619_v28 = vadd.f32 %v1618_v26, %v1617_v25 }
 0x2da   : > { %v1334_v29 = vmin.f32 %v1318_v27, 1.0  ;;  %v1303_v30 = vsub.f32 %v1619_v28, %v2301_v62  ;;  %v1620_v31 = vpop.f32.mrb[42].mxu0 }
 0x2db   : > { %v1621_v32 = vpop.f32.mrb[43].mxu0 }
 0x2dc   : > { %1350 = vst.msk [vmem:[%s2309_s18 + $0x18] sm:$0xff] %vm464_vm0, %v1334_v29  ;;  %v1319_v33 = vmax.f32 %v1303_v30, 0.0  ;;  %v1622_v34 = vadd.f32 %v1621_v32, %v1620_v31 }
 0x2de   : > { %v1335_v35 = vmin.f32 %v1319_v33, 1.0  ;;  %v1304_v36 = vsub.f32 %v1622_v34, %v2301_v62  ;;  %v1623_v37 = vpop.f32.mrb[44].mxu0 }
 0x2df   : > { %v1624_v38 = vpop.f32.mrb[45].mxu0 }
 0x2e0   : > { %1351 = vst.msk [vmem:[%s2309_s18 + $0x20] sm:$0xff] %vm464_vm0, %v1335_v35  ;;  %v1320_v39 = vmax.f32 %v1304_v36, 0.0  ;;  %v1625_v40 = vadd.f32 %v1624_v38, %v1623_v37 }
 0x2e2   : > { %v1336_v41 = vmin.f32 %v1320_v39, 1.0  ;;  %v1305_v42 = vsub.f32 %v1625_v40, %v2301_v62  ;;  %v1626_v43 = vpop.f32.mrb[46].mxu0 }
 0x2e3   : > { %v1627_v44 = vpop.f32.mrb[47].mxu0 }
 0x2e4   : > { %1352 = vst.msk [vmem:[%s2309_s18 + $0x28] sm:$0xff] %vm464_vm0, %v1336_v41  ;;  %v1321_v45 = vmax.f32 %v1305_v42, 0.0  ;;  %v1628_v46 = vadd.f32 %v1627_v44, %v1626_v43 }
 0x2e6   : > { %v1337_v47 = vmin.f32 %v1321_v45, 1.0  ;;  %v1306_v50 = vsub.f32 %v1628_v46, %v2301_v62  ;;  %v1629_v51 = vpop.f32.mrb[48].mxu0 }
 0x2e7   : > { %v1630_v52 = vpop.f32.mrb[49].mxu0 }
 0x2e8   : > { %1353 = vst.msk [vmem:[%s2309_s18 + $0x30] sm:$0xff] %vm464_vm0, %v1337_v47  ;;  %v1322_v53 = vmax.f32 %v1306_v50, 0.0  ;;  %v1631_v54 = vadd.f32 %v1630_v52, %v1629_v51 }
 0x2ea   : > { %v1338_v55 = vmin.f32 %v1322_v53, 1.0  ;;  %v1307_v56 = vsub.f32 %v1631_v54, %v2301_v62  ;;  %v1632_v57 = vpop.f32.mrb[50].mxu0 }
 0x2eb   : > { %v1633_v58 = vpop.f32.mrb[51].mxu0 }
 0x2ec   : > { %1354 = vst.msk [vmem:[%s2309_s18 + $0x38] sm:$0xff] %vm464_vm0, %v1338_v55  ;;  %v1323_v59 = vmax.f32 %v1307_v56, 0.0  ;;  %v1634_v4 = vadd.f32 %v1633_v58, %v1632_v57 }
 0x2ee   : > { %v1339_v48 = vmin.f32 %v1323_v59, 1.0  ;;  %v1308_v60 = vsub.f32 %v1634_v4, %v2301_v62  ;;  %v1635_v1 = vpop.f32.mrb[52].mxu0 }
 0x2ef   : > { %v1636_v2 = vpop.f32.mrb[53].mxu0 }
 0x2f0   : > { %1355 = vst.msk [vmem:[%s2309_s18 + $0x40] sm:$0xff] %vm464_vm0, %v1339_v48  ;;  %v1324_v49 = vmax.f32 %v1308_v60, 0.0  ;;  %v1637_v5 = vadd.f32 %v1636_v2, %v1635_v1 }
 0x2f2   : > { %v1340_v61 = vmin.f32 %v1324_v49, 1.0  ;;  %v1309_v9 = vsub.f32 %v1637_v5, %v2301_v62  ;;  %v1638_v63 = vpop.f32.mrb[54].mxu0 }
 0x2f3   : > { %v1639_v0 = vpop.f32.mrb[55].mxu0 }
 0x2f4   : > { %1356 = vst.msk [vmem:[%s2309_s18 + $0x48] sm:$0xff] %vm464_vm0, %v1340_v61  ;;  %v1325_v10 = vmax.f32 %v1309_v9, 0.0  ;;  %v1640_v3 = vadd.f32 %v1639_v0, %v1638_v63 }
 0x2f6   : > { %v1341_v6 = vmin.f32 %v1325_v10, 1.0  ;;  %v1310_v7 = vsub.f32 %v1640_v3, %v2301_v62  ;;  %v1641_v8 = vpop.f32.mrb[56].mxu0 }
 0x2f7   : > { %v1642_v11 = vpop.f32.mrb[57].mxu0 }
 0x2f8   : > { %1357 = vst.msk [vmem:[%s2309_s18 + $0x50] sm:$0xff] %vm464_vm0, %v1341_v6  ;;  %v1326_v12 = vmax.f32 %v1310_v7, 0.0  ;;  %v1643_v13 = vadd.f32 %v1642_v11, %v1641_v8 }
 0x2fa   : > { %v1342_v14 = vmin.f32 %v1326_v12, 1.0  ;;  %v1311_v15 = vsub.f32 %v1643_v13, %v2301_v62  ;;  %v1644_v16 = vpop.f32.mrb[58].mxu0 }
 0x2fb   : > { %v1645_v17 = vpop.f32.mrb[59].mxu0 }
 0x2fc   : > { %1358 = vst.msk [vmem:[%s2309_s18 + $0x58] sm:$0xff] %vm464_vm0, %v1342_v14  ;;  %v1327_v18 = vmax.f32 %v1311_v15, 0.0  ;;  %v1646_v19 = vadd.f32 %v1645_v17, %v1644_v16 }
 0x2fe   : > { %v1343_v20 = vmin.f32 %v1327_v18, 1.0  ;;  %v1312_v21 = vsub.f32 %v1646_v19, %v2301_v62  ;;  %v1647_v22 = vpop.f32.mrb[60].mxu0 }
 0x2ff   : > { %v1648_v23 = vpop.f32.mrb[61].mxu0 }
 0x300   : > { %1359 = vst.msk [vmem:[%s2309_s18 + $0x60] sm:$0xff] %vm464_vm0, %v1343_v20  ;;  %v1328_v24 = vmax.f32 %v1312_v21, 0.0  ;;  %v1649_v25 = vadd.f32 %v1648_v23, %v1647_v22 }
 0x302   : > { %v1344_v26 = vmin.f32 %v1328_v24, 1.0  ;;  %v1313_v27 = vsub.f32 %v1649_v25, %v2301_v62  ;;  %v1650_v28 = vpop.f32.mrb[62].mxu0 }
 0x303   : > { %v1651_v29 = vpop.f32.mrb[63].mxu0 }
 0x304   : > { %1360 = vst.msk [vmem:[%s2309_s18 + $0x68] sm:$0xff] %vm464_vm0, %v1344_v26  ;;  %v1329_v30 = vmax.f32 %v1313_v27, 0.0  ;;  %v1652_v31 = vadd.f32 %v1651_v29, %v1650_v28 }
 0x306   : > { %v1345_v32 = vmin.f32 %v1329_v30, 1.0  ;;  %v1314_v33 = vsub.f32 %v1652_v31, %v2301_v62 }
 0x308   : > { %1361 = vst.msk [vmem:[%s2309_s18 + $0x70] sm:$0xff] %vm464_vm0, %v1345_v32  ;;  %v1330_v34 = vmax.f32 %v1314_v33, 0.0 }
 0x30a   : > { %v1346_v35 = vmin.f32 %v1330_v34, 1.0 }
 0x30c   : > { %1362 = vst.msk [vmem:[%s2309_s18 + $0x78] sm:$0xff] %vm464_vm0, %v1346_v35 }
 0x30d PF: > { %s20_s29 = sadd.s32 1, %s1887_s29   ;;  %s2387_s24 = smov %s1871_s25 }
 0x30e   : > { %p17_p7 = scmp.ge.s32.totalorder %s20_s29, 4   ;;  %s2388_s25 = smov %s1875_s26 }
 0x30f   : > { %s2389_s26 = smov %s1982_s13  ;;  %s2390_s27 = smov %s1883_s28 }
 0x310   : > { %s2391_s28 = smov %s2393_s8  ;;  %19 = sbr.rel (!%p17_p7) target bundleno = 4 (0x4), region = 106 }
 0x317   :  { %1393 = vsyncpa [#allocation3], 1 }
 0x318   :  { %1395 = vsyncpa [#allocation3 + $0x1], 1 }

</bundles_post_ra>
